<compile_context>
chip_gen: v5e
topology: v5e:2x2
jax: 0.10.0
libtpu: 0.0.40
codegen_flags: <defaults>
</compile_context>

<pallas_src>
import functools

import jax
import jax.numpy as jnp
from jax.experimental import pallas as pl
from jax.experimental.pallas import tpu as pltpu

H1, H2 = 64, 32          # hidden widths from the PyTorch module
LANE = 128               # TPU lane width / padded hidden width


def _round_up(x, m):
    return ((x + m - 1) // m) * m


def _cdiv(a, b):
    return -(-a // b)


def actor_kernel(x_ref, w_ref, b_ref, o_ref, *, d_in, n_actions):
    """One batch tile of the fused MLP.

    x_ref : (TB, d_in)            bf16 input rows (d_in = state_dim rounded to 16)
    w_ref : (d_in + 256, 128)     bf16 [W1 | W2 | W3] stacked, zero-padded, resident
    b_ref : (8, 128)              f32 rows 0/1/2 = b1/b2/b3, zero-padded, resident
    o_ref : (TB, n_actions)       f32 softmax probabilities (real width, no padding)
    """
    x = x_ref[...]                                          # (TB, d_in) bf16

    # Static, sublane-aligned slices of the packed parameter slabs (views).
    w1 = w_ref[0:d_in, :]
    w2 = w_ref[d_in:d_in + LANE, :]
    w3 = w_ref[d_in + LANE:d_in + 2 * LANE, :]
    b1 = b_ref[0:1, :]
    b2 = b_ref[1:2, :]
    b3 = b_ref[2:3, :]

    # fc1 + tanh   (state_dim -> 64, lane-padded to 128; padded lanes stay 0)
    h1 = jnp.tanh(jnp.dot(x, w1, preferred_element_type=jnp.float32) + b1)
    # fc2 + tanh   (64 -> 32, lane-padded to 128)
    h2 = jnp.tanh(
        jnp.dot(h1.astype(jnp.bfloat16), w2, preferred_element_type=jnp.float32) + b2)
    # fc3          (32 -> n_actions, lane-padded to 128)
    logits = jnp.dot(h2.astype(jnp.bfloat16), w3,
                     preferred_element_type=jnp.float32) + b3

    # Mask padded action lanes so they contribute exp(-inf) = 0 to the softmax.
    col = jax.lax.broadcasted_iota(jnp.int32, logits.shape, 1)
    logits = jnp.where(col < n_actions, logits, -jnp.inf)

    # Numerically-stable softmax with exact f32 divide (denom >= 1).
    m = jnp.max(logits, axis=-1, keepdims=True)
    e = jnp.exp(logits - m)
    denom = jnp.sum(e, axis=-1, keepdims=True)
    probs = e / denom

    # Store only the real action columns (masked vst; 32x fewer HBM bytes).
    o_ref[...] = probs[:, :n_actions].astype(o_ref.dtype)


def pack_params(params, state_dim, n_actions):
    """Pack the 6 parameter tensors into one bf16 weight slab and one f32 bias
    slab (2 resident DMAs total)."""
    assert n_actions <= LANE, "packing assumes n_actions <= 128"
    d_in = _round_up(state_dim, 16)   # 16: keeps bf16 sublane-packed slices aligned

    w1p = jnp.zeros((d_in, LANE), jnp.float32).at[:state_dim, :H1].set(params["w1"])
    w2p = jnp.zeros((LANE, LANE), jnp.float32).at[:H1, :H2].set(params["w2"])
    w3p = jnp.zeros((LANE, LANE), jnp.float32).at[:H2, :n_actions].set(params["w3"])
    w_packed = jnp.concatenate([w1p, w2p, w3p], axis=0).astype(jnp.bfloat16)

    b_packed = jnp.zeros((8, LANE), jnp.float32)
    b_packed = b_packed.at[0, :H1].set(params["b1"].reshape(-1))
    b_packed = b_packed.at[1, :H2].set(params["b2"].reshape(-1))
    b_packed = b_packed.at[2, :n_actions].set(params["b3"].reshape(-1))
    return w_packed, b_packed


@functools.partial(
    jax.jit,
    static_argnames=("state_dim", "n_actions", "d_in", "tb", "num_tiles"))
def _actor_forward_impl(x, w_packed, b_packed, *, state_dim, n_actions,
                        d_in, tb, num_tiles):
    batch = x.shape[0]
    b_pad = tb * num_tiles

    # bf16 MXU operands; pad rows (and up to 15 feature cols) only if needed.
    x_bf = x.astype(jnp.bfloat16)
    if batch != b_pad or state_dim != d_in:
        x_in = jnp.zeros((b_pad, d_in), jnp.bfloat16).at[:batch, :state_dim].set(x_bf)
    else:
        x_in = x_bf

    kernel = functools.partial(actor_kernel, d_in=d_in, n_actions=n_actions)

    out = pl.pallas_call(
        kernel,
        out_shape=jax.ShapeDtypeStruct((b_pad, n_actions), jnp.float32),
        grid=(num_tiles,),
        in_specs=[
            pl.BlockSpec((tb, d_in), lambda i: (i, 0)),            # x tile (full feat dim)
            pl.BlockSpec(w_packed.shape, lambda i: (0, 0)),        # weights: VMEM-resident
            pl.BlockSpec(b_packed.shape, lambda i: (0, 0)),        # biases:  VMEM-resident
        ],
        out_specs=pl.BlockSpec((tb, n_actions), lambda i: (i, 0)), # real-width output
        compiler_params=pltpu.CompilerParams(
            dimension_semantics=("parallel",),    # shard batch grid on v7x's 2 TCs
        ),
    )(x_in, w_packed, b_packed)

    return out[:batch] if b_pad != batch else out


def actor_forward(x, w_packed, b_packed, *, state_dim, n_actions, block_batch=1024):
    """x: (batch, state_dim) float32 -> (batch, n_actions) action probabilities."""
    batch = x.shape[0]
    d_in = w_packed.shape[0] - 2 * LANE

    # Adaptive batch tiling: amortize per-step overhead, avoid huge padding on
    # non-multiple batches, and give v7x's 2nd TensorCore work when batch > 128.
    num_tiles = max(1, _cdiv(batch, block_batch))
    if num_tiles == 1 and batch > 128:
        num_tiles = 2
    tb = _round_up(_cdiv(batch, num_tiles), 8)

    return _actor_forward_impl(x, w_packed, b_packed,
                               state_dim=state_dim, n_actions=n_actions,
                               d_in=d_in, tb=tb, num_tiles=num_tiles)


def init_params(key, state_dim, n_actions):
    """PyTorch-Linear-style U(-1/sqrt(fan_in), 1/sqrt(fan_in)) init, (in, out) layout."""
    def linear(k, fan_in, fan_out):
        kw, kb = jax.random.split(k)
        bound = 1.0 / jnp.sqrt(fan_in)
        w = jax.random.uniform(kw, (fan_in, fan_out), jnp.float32, -bound, bound)
        b = jax.random.uniform(kb, (fan_out,), jnp.float32, -bound, bound)
        return w, b

    k1, k2, k3 = jax.random.split(key, 3)
    w1, b1 = linear(k1, state_dim, H1)
    w2, b2 = linear(k2, H1, H2)
    w3, b3 = linear(k3, H2, n_actions)
    return {"w1": w1, "b1": b1, "w2": w2, "b2": b2, "w3": w3, "b3": b3}


def actor_forward_ref(x, params):
    h1 = jnp.tanh(x @ params["w1"] + params["b1"])
    h2 = jnp.tanh(h1 @ params["w2"] + params["b2"])
    logits = h2 @ params["w3"] + params["b3"]
    return jax.nn.softmax(logits, axis=-1)


# TODO(synk): Actor.save()/load() (torch checkpoint I/O) is host-side file I/O,
# not a kernel op; no Pallas equivalent implemented.

if __name__ == "__main__":
    key = jax.random.PRNGKey(0)
    k_param, k_x, k_x2 = jax.random.split(key, 3)

    batch, state_dim, n_actions = 8, 16, 4
    params = init_params(k_param, state_dim, n_actions)
    w_packed, b_packed = pack_params(params, state_dim, n_actions)

    # Small-shape check (single grid step).
    x = jax.random.normal(k_x, (batch, state_dim), jnp.float32)
    out = actor_forward(x, w_packed, b_packed, state_dim=state_dim, n_actions=n_actions)
    out = jax.block_until_ready(out)
    ref = actor_forward_ref(x, params)
    assert out.shape == (batch, n_actions)
    # bf16 MXU operands -> tolerance on the probabilities is loosened.
    assert jnp.allclose(out, ref, atol=2e-2), "mismatch vs JAX reference (small batch)"
    # exact f32 divide -> rows sum to 1 to f32 precision
    assert jnp.allclose(jnp.sum(out, axis=-1), 1.0, atol=1e-5), "softmax rows must sum to 1"

    # Larger, non-multiple batch: exercises 2 grid steps (v7x parallel) + row padding.
    big = 260
    x_big = jax.random.normal(k_x2, (big, state_dim), jnp.float32)
    out_big = actor_forward(x_big, w_packed, b_packed, state_dim=state_dim, n_actions=n_actions)
    out_big = jax.block_until_ready(out_big)
    ref_big = actor_forward_ref(x_big, params)
    assert out_big.shape == (big, n_actions)
    assert jnp.allclose(out_big, ref_big, atol=2e-2), "mismatch vs JAX reference (big batch)"
    assert jnp.allclose(jnp.sum(out_big, axis=-1), 1.0, atol=1e-5), "softmax rows must sum to 1"

    print("KERNEL_OK")
</pallas_src>

<mosaic_0001>
module attributes {stable_mosaic.version = 11 : i64} {
  func.func @actor_kernel(%arg0: i32, %arg1: memref<8x16xbf16, #tpu.memory_space<vmem>>, %arg2: memref<272x128xbf16, #tpu.memory_space<vmem>>, %arg3: memref<8x128xf32, #tpu.memory_space<vmem>>, %arg4: memref<8x4xf32, #tpu.memory_space<vmem>>) attributes {dimension_semantics = [#tpu.dimension_semantics<parallel>], iteration_bounds = array<i64: 1>, scalar_prefetch = 0 : i64, scratch_operands = 0 : i64, tpu.core_type = #tpu.core_type<tc>, window_params = [{transform_indices = @transform_0, window_bounds = array<i64: 8, 16>}, {pipeline_mode = #tpu.pipeline_mode<synchronous>, transform_indices = @transform_1, window_bounds = array<i64: 272, 128>}, {pipeline_mode = #tpu.pipeline_mode<synchronous>, transform_indices = @transform_2, window_bounds = array<i64: 8, 128>}, {transform_indices = @transform_3, window_bounds = array<i64: 8, 4>}]} {
    %c0 = arith.constant 0 : index
    %c0_0 = arith.constant 0 : index
    %0 = vector.load %arg1[%c0, %c0_0] : memref<8x16xbf16, #tpu.memory_space<vmem>>, vector<8x16xbf16>
    %c0_1 = arith.constant 0 : index
    %c0_2 = arith.constant 0 : index
    %1 = vector.load %arg2[%c0_1, %c0_2] : memref<272x128xbf16, #tpu.memory_space<vmem>>, vector<16x128xbf16>
    %c16 = arith.constant 16 : index
    %c0_3 = arith.constant 0 : index
    %2 = vector.load %arg2[%c16, %c0_3] : memref<272x128xbf16, #tpu.memory_space<vmem>>, vector<128x128xbf16>
    %c144 = arith.constant 144 : index
    %c0_4 = arith.constant 0 : index
    %3 = vector.load %arg2[%c144, %c0_4] : memref<272x128xbf16, #tpu.memory_space<vmem>>, vector<128x128xbf16>
    %c0_5 = arith.constant 0 : index
    %c0_6 = arith.constant 0 : index
    %4 = vector.load %arg3[%c0_5, %c0_6] : memref<8x128xf32, #tpu.memory_space<vmem>>, vector<1x128xf32>
    %c1 = arith.constant 1 : index
    %c0_7 = arith.constant 0 : index
    %5 = vector.load %arg3[%c1, %c0_7] : memref<8x128xf32, #tpu.memory_space<vmem>>, vector<1x128xf32>
    %c2 = arith.constant 2 : index
    %c0_8 = arith.constant 0 : index
    %6 = vector.load %arg3[%c2, %c0_8] : memref<8x128xf32, #tpu.memory_space<vmem>>, vector<1x128xf32>
    %cst = arith.constant dense<0.000000e+00> : vector<8x128xf32>
    %7 = tpu.matmul %0, %1, %cst {dimension_numbers = #tpu.dot_dimension_numbers<[1], [0], [0], [1], [0, 0, 1, 1], [], []>} : vector<8x16xbf16>, vector<16x128xbf16>, vector<8x128xf32> -> vector<8x128xf32>
    %8 = vector.broadcast %4 : vector<1x128xf32> to vector<8x128xf32>
    %9 = arith.addf %7, %8 : vector<8x128xf32>
    %10 = math.tanh %9 : vector<8x128xf32>
    %11 = arith.truncf %10 : vector<8x128xf32> to vector<8x128xbf16>
    %cst_9 = arith.constant dense<0.000000e+00> : vector<8x128xf32>
    %12 = tpu.matmul %11, %2, %cst_9 {dimension_numbers = #tpu.dot_dimension_numbers<[1], [0], [0], [1], [0, 0, 1, 1], [], []>} : vector<8x128xbf16>, vector<128x128xbf16>, vector<8x128xf32> -> vector<8x128xf32>
    %13 = vector.broadcast %5 : vector<1x128xf32> to vector<8x128xf32>
    %14 = arith.addf %12, %13 : vector<8x128xf32>
    %15 = math.tanh %14 : vector<8x128xf32>
    %16 = arith.truncf %15 : vector<8x128xf32> to vector<8x128xbf16>
    %cst_10 = arith.constant dense<0.000000e+00> : vector<8x128xf32>
    %17 = tpu.matmul %16, %3, %cst_10 {dimension_numbers = #tpu.dot_dimension_numbers<[1], [0], [0], [1], [0, 0, 1, 1], [], []>} : vector<8x128xbf16>, vector<128x128xbf16>, vector<8x128xf32> -> vector<8x128xf32>
    %18 = vector.broadcast %6 : vector<1x128xf32> to vector<8x128xf32>
    %19 = arith.addf %17, %18 : vector<8x128xf32>
    %20 = tpu.iota {dimensions = array<i32: 1>} : vector<8x128xi32>
    %c4_i32 = arith.constant 4 : i32
    %21 = vector.broadcast %c4_i32 : i32 to vector<8x128xi32>
    %22 = arith.cmpi slt, %20, %21 : vector<8x128xi32>
    %cst_11 = arith.constant 0xFF800000 : f32
    %23 = vector.broadcast %cst_11 : f32 to vector<8x128xf32>
    %24 = arith.select %22, %19, %23 : vector<8x128xi1>, vector<8x128xf32>
    %cst_12 = arith.constant dense<0xFF800000> : vector<8xf32>
    %25 = vector.multi_reduction <maximumf>, %24, %cst_12 [1] : vector<8x128xf32> to vector<8xf32>
    %26 = vector.shape_cast %25 : vector<8xf32> to vector<8x1xf32>
    %27 = vector.broadcast %26 : vector<8x1xf32> to vector<8x128xf32>
    %28 = arith.subf %24, %27 : vector<8x128xf32>
    %29 = math.exp %28 : vector<8x128xf32>
    %cst_13 = arith.constant dense<0.000000e+00> : vector<8xf32>
    %30 = vector.multi_reduction <add>, %29, %cst_13 [1] : vector<8x128xf32> to vector<8xf32>
    %31 = vector.shape_cast %30 : vector<8xf32> to vector<8x1xf32>
    %32 = vector.broadcast %31 : vector<8x1xf32> to vector<8x128xf32>
    %33 = arith.divf %29, %32 : vector<8x128xf32>
    %34 = vector.extract_strided_slice %33 {offsets = [0, 0], sizes = [8, 4], strides = [1, 1]} : vector<8x128xf32> to vector<8x4xf32>
    %c0_14 = arith.constant 0 : index
    %c0_15 = arith.constant 0 : index
    %35 = vector.load %arg4[%c0_14, %c0_15] : memref<8x4xf32, #tpu.memory_space<vmem>>, vector<8x4xf32>
    tpu.vector_store %arg4[%c0_14, %c0_15], %34 {strides = array<i32>} : memref<8x4xf32, #tpu.memory_space<vmem>>, vector<8x4xf32>,
    return
  }
  func.func @transform_0(%arg0: i32) -> (i32, i32) {
    %c0_i32 = arith.constant 0 : i32
    %c0_i32_0 = arith.constant 0 : i32
    return %arg0, %c0_i32 : i32, i32
  }
  func.func @transform_1(%arg0: i32) -> (i32, i32) {
    %c0_i32 = arith.constant 0 : i32
    %c0_i32_0 = arith.constant 0 : i32
    %c0_i32_1 = arith.constant 0 : i32
    return %c0_i32, %c0_i32_0 : i32, i32
  }
  func.func @transform_2(%arg0: i32) -> (i32, i32) {
    %c0_i32 = arith.constant 0 : i32
    %c0_i32_0 = arith.constant 0 : i32
    %c0_i32_1 = arith.constant 0 : i32
    return %c0_i32, %c0_i32_0 : i32, i32
  }
  func.func @transform_3(%arg0: i32) -> (i32, i32) {
    %c0_i32 = arith.constant 0 : i32
    %c0_i32_0 = arith.constant 0 : i32
    return %arg0, %c0_i32 : i32, i32
  }
}

</mosaic_0001>

<bundles_post_ra>
// kernel: _actor_forward_impl.1
= control target key start
LH: loop header
LB: loop body
LE: loop exit
PB: predicated region body
PF: predicated region fallthrough
CT: control target
= control target key end

     0   :  { %8 = vsyncpa [#allocation3], 0  ;;  %s380_s15 = smov [#allocation2]   ;;  %s381_s17 = smov 64   ;;  %s421_s0 = inlined_call_operand.vmem [shape: bf16[8,16], index: 0, kind: input, shape index: {}]   ;;  %s422_s1 = inlined_call_operand.hbm [shape: bf16[272,128], index: 1, kind: input, shape index: {}]   ;;  %s423_s2 = inlined_call_operand.vmem [shape: f32[8,128], index: 2, kind: input, shape index: {}]   ;;  %s424_s3 = inlined_call_operand.vmem [shape: f32[8,4], index: 3, kind: output, shape index: {}]  }
   0x1   :  { %s15_s14 = sshll.u32 %s422_s1, 4  ;;  %s17_s16 = sshll.u32 %s380_s15, 4  ;;  %s16_s14 = int_to_ptr.hbm [resolvable:$true] %s15_s14  ;;  %s18_s16 = int_to_ptr.vmem [resolvable:$true] %s17_s16 }
   0x2   :  { %s382_s18 = smov 4  }
   0x3   :  { %23 = dma.hbm_to_vmem [thread:$0]  %s16_s14, 2176, %s18_s16, [#allocation3], %s381_s17, %s381_s17, %s382_s18  }
   0x4   :  { %378 = dma.done.wait [#allocation3], 2176  }
   0x5   :  { %379 = vsyncadd [#allocation3], 4294965120  ;;  %v323_v0 = vld [vmem:[#allocation2] sm:$0xff]  ;;  %vm76_vm0 = vcmask 130048   ;;  %v330_v3 = vld [vmem:[#allocation2 + $0x38] sm:$0xff]  ;;  %v221_v30 = vlaneseq  ;;  %vm247_vm6 = vcmask 31744  }
   0x6   :  { %v331_v1 = vld [vmem:[#allocation2 + $0x40] sm:$0xff]  ;;  %87 = vmatpush.bf16.msra.mxu0 %v323_v0  ;;  %v329_v4 = vld [vmem:[#allocation2 + $0x30] sm:$0xff]  ;;  %v328_v5 = vld [vmem:[#allocation2 + $0x28] sm:$0xff] }
   0x7   :  { %v31_v2 = vld [vmem:[%s421_s0] sm:$0xf]  ;;  %144 = vmatpush.bf16.msra.mxu1 %v331_v1  ;;  %v326_v7 = vld [vmem:[#allocation2 + $0x18] sm:$0xff]  ;;  %v325_v8 = vld [vmem:[#allocation2 + $0x10] sm:$0xff]  ;;  %v222_v31 = vand.u32 127, %v221_v30 }
   0x8   :  { %v327_v6 = vld [vmem:[#allocation2 + $0x20] sm:$0xff]  ;;  %v324_v9 = vld [vmem:[#allocation2 + $0x8] sm:$0xff]  ;;  %v338_v11 = vld [vmem:[#allocation2 + $0x78] sm:$0xff] }
   0x9   :  { %258 = vmatmul.msk.bf16.vlgmr.msra.gmra.mxu0 %vm76_vm0, %v31_v2  ;;  %v339_v10 = vld [vmem:[#allocation2 + $0x80] sm:$0xff]  ;;  %v337_v12 = vld [vmem:[#allocation2 + $0x70] sm:$0xff]  ;;  %v336_v13 = vld [vmem:[#allocation2 + $0x68] sm:$0xff]  ;;  %vm223_vm1 = vcmp.lt.s32.totalorder %v222_v31, 4 }
   0xa   :  { %208 = vmatpush.bf16.msra.mxu2 %v339_v10  ;;  %v335_v14 = vld [vmem:[#allocation2 + $0x60] sm:$0xff]  ;;  %v334_v21 = vld [vmem:[#allocation2 + $0x58] sm:$0xff]  ;;  %v333_v22 = vld [vmem:[#allocation2 + $0x50] sm:$0xff] }
   0xb   :  { %145 = vmatpush.bf16.msra.mxu1 %v330_v3  ;;  %v343_v15 = vld [vmem:[%s423_s2] ss:$0 sm:$0xff]  ;;  %v332_v23 = vld [vmem:[#allocation2 + $0x48] sm:$0xff]  ;;  %v344_v24 = vld [vmem:[%s423_s2 + $0x1] ss:$0 sm:$0xff] }
   0xc   :  { %v345_v32 = vld [vmem:[%s423_s2 + $0x2] ss:$0 sm:$0xff] }
   0xe   :  { %209 = vmatpush.bf16.msra.mxu2 %v338_v11 }
   0xf   :  { %146 = vmatpush.bf16.msra.mxu1 %v329_v4 }
  0x12   :  { %210 = vmatpush.bf16.msra.mxu2 %v337_v12 }
  0x13   :  { %147 = vmatpush.bf16.msra.mxu1 %v328_v5 }
  0x16   :  { %211 = vmatpush.bf16.msra.mxu2 %v336_v13 }
  0x17   :  { %148 = vmatpush.bf16.msra.mxu1 %v327_v6 }
  0x1a   :  { %212 = vmatpush.bf16.msra.mxu2 %v335_v14 }
  0x1b   :  { %149 = vmatpush.bf16.msra.mxu1 %v326_v7 }
  0x1e   :  { %213 = vmatpush.bf16.msra.mxu2 %v334_v21 }
  0x1f   :  { %150 = vmatpush.bf16.msra.mxu1 %v325_v8 }
  0x22   :  { %214 = vmatpush.bf16.msra.mxu2 %v333_v22 }
  0x23   :  { %151 = vmatpush.bf16.msra.mxu1 %v324_v9 }
  0x26   :  { %215 = vmatpush.bf16.msra.mxu2 %v332_v23 }
  0x86   :  { %v89_v16 = vpop.f32.mrf.mxu0 }
  0x87   :  { %v90_v17 = vadd.f32 %v343_v15, %v89_v16 }
  0x89   :  { %346 = vtanh.f32 %v90_v17 }
  0x8e   :  { %v91_v18 = vpop.f32.mrf.mxu0 }
  0x8f   :  { %v347_v19 = vpop.eup %346 }
  0x90   :  { %v94_v20 = vpack.c.bf16 %v347_v19, %v347_v19 }
  0x92   :  { %152 = vmatmul.bf16.vlgmr.msra.gmra.mxu1 %v94_v20 }
 0x10f   :  { %v153_v25 = vpop.f32.mrf.mxu1 }
 0x110   :  { %v154_v26 = vadd.f32 %v344_v24, %v153_v25 }
 0x112   :  { %348 = vtanh.f32 %v154_v26 }
 0x117   :  { %v155_v27 = vpop.f32.mrf.mxu1 }
 0x118   :  { %v349_v28 = vpop.eup %348 }
 0x119   :  { %v158_v29 = vpack.c.bf16 %v349_v28, %v349_v28 }
 0x11b   :  { %216 = vmatmul.bf16.vlgmr.msra.gmra.mxu2 %v158_v29 }
 0x19e   :  { %v217_v33 = vpop.f32.mrf.mxu2 }
 0x19f   :  { %v218_v34 = vadd.f32 %v345_v32, %v217_v33 }
 0x1a1   :  { %v224_v35 = vsel %vm223_vm1, %v218_v34, -inf }
 0x1a2   :  { %225 = vmax.xlane.f32.xlu0 %v224_v35 }
 0x1a6   :  { %v219_v36 = vpop.f32.mrf.mxu2 }
 0x215   :  { %v226_v37 = vpop.xlane.xlu0 %225 }
 0x216   :  { %v227_v38 = vsub.f32 %v224_v35, %v226_v37 }
 0x218   :  { %v228_v39 = vmul.f32 1.442695, %v227_v38 }
 0x21a   :  { %350 = vpow2.f32 %v228_v39 }
 0x220   :  { %v351_v40 = vpop.eup %350 }
 0x221   :  { %230 = vadd.xlane.f32.xlu0 %v351_v40 }
 0x294   :  { %v231_v41 = vpop.xlane.xlu0 %230 }
 0x295   :  { %352 = vrcp.f32 %v231_v41  ;;  %v243_v45 = vand.u32 2147483648, %v231_v41  ;;  %v241_v47 = vand.u32 2147483647, %v231_v41  ;;  %vm237_vm3 = vweird.f32 %v231_v41 }
 0x297   :  { %v244_v49 = vor.u32 1.1754944e-38, %v243_v45  ;;  %vm242_vm5 = vcmp.eq.f32.partialorder %v241_v47, 8.507059e+37 }
 0x29b   :  { %v353_v42 = vpop.eup %352 }
 0x29c   :  { %v233_v43 = vmul.f32 %v353_v42, %v231_v41  ;;  %vm238_vm2 = vweird.f32 %v353_v42 }
 0x29d   :  { %vm239_vm4 = vmor %vm237_vm3, %vm238_vm2 }
 0x29e   :  { %v234_v44 = vsub.f32 1.0, %v233_v43 }
 0x2a0   :  { %v235_v46 = vmul.f32 %v353_v42, %v234_v44 }
 0x2a2   :  { %v236_v48 = vadd.f32 %v353_v42, %v235_v46 }
 0x2a4   :  { %v240_v50 = vsel %vm239_vm4, %v353_v42, %v236_v48 }
 0x2a5   :  { %v245_v51 = vsel %vm242_vm5, %v244_v49, %v240_v50 }
 0x2a6   :  { %v246_v52 = vmul.f32 %v351_v40, %v245_v51 }
 0x2a8   :  { %248 = vst.msk [vmem:[%s424_s3] sm:$0xff] %vm247_vm6, %v246_v52 }
 0x2a9   :  { %253 = vsyncpa [#allocation3], 1 }

</bundles_post_ra>
